<compile_context>
chip_gen: v5e
topology: v5e:2x2
jax: 0.10.0
libtpu: 0.0.40
codegen_flags: <defaults>
</compile_context>

<pallas_src>
import jax
import jax.numpy as jnp
import numpy as np
from jax import lax
from jax.experimental import pallas as pl
from jax.experimental.pallas import tpu as pltpu


def _round_up(v, m):
    return ((v + m - 1) // m) * m


def _pick_row_tile(m):
    """Pick (M_pad, tm): tm as large as possible (<=256) with <~12% pad waste."""
    m8 = _round_up(m, 8)
    if m8 <= 256:
        return m8, m8                      # single row tile
    for t in (256, 128, 64, 32, 16, 8):
        m_pad = _round_up(m, t)
        if 8 * (m_pad - m) <= m:           # <= 12.5% wasted rows
            return m_pad, t
    return m8, 8


def _pick_col_tile(dim):
    """Pick (dim_pad, tile) for a lane (last) dimension.

    Prefer 512/256-wide tiles (v6e/v7x MXUs are 256 wide) as long as the
    padding waste stays <= 25%; otherwise fall back to 128-multiples, which
    map cleanly onto v5e's 128-wide MXU.
    """
    for t in (512, 256):
        padded = _round_up(dim, t)
        if dim >= t and 4 * (padded - dim) <= dim:
            return padded, t
    padded = _round_up(dim, 128)
    if padded <= 512:
        return padded, padded              # single lane tile
    if padded % 256 == 0:
        return padded, 256
    return padded, 128


def _linear_kernel_single_k(x_ref, w_ref, b_ref, o_ref):
    # x: (tm, K_pad), w: (tn, K_pad); contract the shared last dim (x @ W^T).
    acc = lax.dot_general(
        x_ref[...], w_ref[...],
        dimension_numbers=(((1,), (1,)), ((), ())),
        preferred_element_type=jnp.float32)
    o_ref[...] = (acc + b_ref[...]).astype(o_ref.dtype)


def _linear_kernel_multi_k(x_ref, w_ref, b_ref, o_ref, acc_ref):
    # grid = (M tiles, N tiles, K tiles); K is the reduction axis (last).
    k = pl.program_id(2)

    @pl.when(k == 0)
    def _():
        acc_ref[...] = jnp.zeros_like(acc_ref)

    acc_ref[...] += lax.dot_general(
        x_ref[...], w_ref[...],
        dimension_numbers=(((1,), (1,)), ((), ())),
        preferred_element_type=jnp.float32)

    @pl.when(k == pl.num_programs(2) - 1)
    def _():
        o_ref[...] = (acc_ref[...] + b_ref[...]).astype(o_ref.dtype)


def meta_linear_forward(x, weight, bias=None):
    """F.linear(x, weight, bias) equivalent: x @ weight.T + bias."""
    *lead, K = x.shape
    N, Kw = weight.shape
    assert Kw == K, (weight.shape, x.shape)
    out_dtype = x.dtype
    M = int(np.prod(lead)) if lead else 1

    if M == 0:                                     # empty leading dims
        return jnp.zeros((*lead, N), out_dtype)

    x2 = x.reshape(M, K)
    w = weight
    if w.dtype != x2.dtype:
        # Pre-stored narrow (e.g. bf16) weights keep their dtype (the weight is
        # the bandwidth-dominant operand); cast the small activation matrix
        # instead.  Accumulation stays float32 either way.
        if jnp.dtype(w.dtype).itemsize < jnp.dtype(x2.dtype).itemsize:
            x2 = x2.astype(w.dtype)
        else:
            w = w.astype(x2.dtype)
    if bias is None:
        b_row = jnp.zeros((1, N), jnp.float32)
    else:
        b_row = bias.reshape(1, N).astype(jnp.float32)

    # ---- tile selection ---------------------------------------------------
    M_pad, tm = _pick_row_tile(M)
    N_pad, tn = _pick_col_tile(N)
    K_pad, tk = _pick_col_tile(K)

    # v7x has two TensorCores: make sure the "parallel" (M, N) grid axes have
    # at least two tiles to shard, when that keeps tn a lane-dense multiple
    # of 128.
    if (M_pad // tm) * (N_pad // tn) < 2 and N_pad >= 256 and (N_pad // 2) % 128 == 0:
        tn = N_pad // 2

    # ---- zero padding (no-op when already aligned) ------------------------
    if (M_pad, K_pad) != (M, K):
        x2 = jnp.pad(x2, ((0, M_pad - M), (0, K_pad - K)))
    if (N_pad, K_pad) != (N, K):
        w = jnp.pad(w, ((0, N_pad - N), (0, K_pad - K)))
    if N_pad != N:
        b_row = jnp.pad(b_row, ((0, 0), (0, N_pad - N)))

    n_k = K_pad // tk
    x_bytes = x2.size * jnp.dtype(x2.dtype).itemsize
    w_bytes = w.size * jnp.dtype(w.dtype).itemsize
    cost = pl.CostEstimate(
        flops=2 * M_pad * K_pad * N_pad,
        transcendentals=0,
        bytes_accessed=(x_bytes * (N_pad // tn)        # x re-streamed per N tile
                        + w_bytes * (M_pad // tm)      # w re-streamed per M tile
                        + M_pad * N_pad * jnp.dtype(out_dtype).itemsize
                        + N_pad * 4),
    )

    if n_k == 1:
        # Fast path: no reduction grid axis, no accumulator scratch.
        kernel = _linear_kernel_single_k
        grid_spec = pltpu.PrefetchScalarGridSpec(
            num_scalar_prefetch=0,
            grid=(M_pad // tm, N_pad // tn),
            in_specs=[
                pl.BlockSpec((tm, tk), lambda i, j: (i, 0)),   # activations
                pl.BlockSpec((tn, tk), lambda i, j: (j, 0)),   # weight (N,K) tile
                pl.BlockSpec((1, tn), lambda i, j: (0, j)),    # bias row
            ],
            out_specs=pl.BlockSpec((tm, tn), lambda i, j: (i, j)),
        )
        dims = ("parallel", "parallel")
    else:
        kernel = _linear_kernel_multi_k
        grid_spec = pltpu.PrefetchScalarGridSpec(
            num_scalar_prefetch=0,
            grid=(M_pad // tm, N_pad // tn, n_k),
            in_specs=[
                pl.BlockSpec((tm, tk), lambda i, j, k: (i, k)),   # activations
                pl.BlockSpec((tn, tk), lambda i, j, k: (j, k)),   # weight (N,K) tile
                pl.BlockSpec((1, tn), lambda i, j, k: (0, j)),    # bias row
            ],
            out_specs=pl.BlockSpec((tm, tn), lambda i, j, k: (i, j)),
            scratch_shapes=[pltpu.VMEM((tm, tn), jnp.float32)],   # f32 accumulator
        )
        dims = ("parallel", "parallel", "arbitrary")

    out = pl.pallas_call(
        kernel,
        out_shape=jax.ShapeDtypeStruct((M_pad, N_pad), out_dtype),
        grid_spec=grid_spec,
        compiler_params=pltpu.CompilerParams(dimension_semantics=dims),
        cost_estimate=cost,
    )(x2, w, b_row)

    out = out[:M, :N]
    return out.reshape(*lead, N)


if __name__ == "__main__":
    key = jax.random.PRNGKey(0)
    k1, k2, k3, k4, k5, k6 = jax.random.split(key, 6)

    # ---- Case 1: MetaLinear(in=32, out=64), x: (batch=2, seq=8, 32) --------
    # (single-K-tile fast path)
    B, S, IN, OUT = 2, 8, 32, 64
    bound = 1.0 / np.sqrt(IN)
    x = jax.random.normal(k1, (B, S, IN), jnp.float32)
    weight = jax.random.uniform(k2, (OUT, IN), jnp.float32,
                                minval=-bound, maxval=bound)
    bias = jax.random.uniform(k3, (OUT,), jnp.float32,
                              minval=-bound, maxval=bound)

    ref = x @ weight.T + bias                       # F.linear reference
    out = jax.block_until_ready(meta_linear_forward(x, weight, bias))
    assert out.shape == (B, S, OUT), out.shape
    np.testing.assert_allclose(np.asarray(out), np.asarray(ref),
                               rtol=1e-4, atol=1e-4)

    # ---- Case 2: larger in_features, exercises the K-reduction path --------
    IN2, OUT2 = 1000, 192
    bound2 = 1.0 / np.sqrt(IN2)
    x_b = jax.random.normal(k4, (B, S, IN2), jnp.float32)
    w_b = jax.random.uniform(k5, (OUT2, IN2), jnp.float32,
                             minval=-bound2, maxval=bound2)
    b_b = jax.random.uniform(k6, (OUT2,), jnp.float32,
                             minval=-bound2, maxval=bound2)

    ref_b = x_b @ w_b.T + b_b
    out_b = jax.block_until_ready(meta_linear_forward(x_b, w_b, b_b))
    assert out_b.shape == (B, S, OUT2), out_b.shape
    np.testing.assert_allclose(np.asarray(out_b), np.asarray(ref_b),
                               rtol=1e-4, atol=1e-4)

    print("KERNEL_OK")
</pallas_src>

<mosaic_0001>
module attributes {stable_mosaic.version = 11 : i64} {
  func.func @_linear_kernel_single_k(%arg0: i32, %arg1: i32, %arg2: memref<16x128xf32, #tpu.memory_space<vmem>>, %arg3: memref<128x128xf32, #tpu.memory_space<vmem>>, %arg4: memref<1x128xf32, #tpu.memory_space<vmem>>, %arg5: memref<16x128xf32, #tpu.memory_space<vmem>>) attributes {dimension_semantics = [#tpu.dimension_semantics<parallel>, #tpu.dimension_semantics<parallel>], iteration_bounds = array<i64: 1, 1>, scalar_prefetch = 0 : i64, scratch_operands = 0 : i64, tpu.core_type = #tpu.core_type<tc>, window_params = [{transform_indices = @transform_0, window_bounds = array<i64: 16, 128>}, {transform_indices = @transform_1, window_bounds = array<i64: 128, 128>}, {transform_indices = @transform_2, window_bounds = array<i64: 1, 128>}, {transform_indices = @transform_3, window_bounds = array<i64: 16, 128>}]} {
    %c0 = arith.constant 0 : index
    %c0_0 = arith.constant 0 : index
    %0 = vector.load %arg2[%c0, %c0_0] : memref<16x128xf32, #tpu.memory_space<vmem>>, vector<16x128xf32>
    %c0_1 = arith.constant 0 : index
    %c0_2 = arith.constant 0 : index
    %1 = vector.load %arg3[%c0_1, %c0_2] : memref<128x128xf32, #tpu.memory_space<vmem>>, vector<128x128xf32>
    %cst = arith.constant dense<0.000000e+00> : vector<16x128xf32>
    %2 = tpu.matmul %0, %1, %cst {dimension_numbers = #tpu.dot_dimension_numbers<[1], [1], [0], [0], [0, 0, 1, 0], [], []>} : vector<16x128xf32>, vector<128x128xf32>, vector<16x128xf32> -> vector<16x128xf32>
    %c0_3 = arith.constant 0 : index
    %c0_4 = arith.constant 0 : index
    %3 = vector.load %arg4[%c0_3, %c0_4] : memref<1x128xf32, #tpu.memory_space<vmem>>, vector<1x128xf32>
    %4 = vector.broadcast %3 : vector<1x128xf32> to vector<16x128xf32>
    %5 = arith.addf %2, %4 : vector<16x128xf32>
    %c0_5 = arith.constant 0 : index
    %c0_6 = arith.constant 0 : index
    %6 = vector.load %arg5[%c0_5, %c0_6] : memref<16x128xf32, #tpu.memory_space<vmem>>, vector<16x128xf32>
    tpu.vector_store %arg5[%c0_5, %c0_6], %5 {strides = array<i32>} : memref<16x128xf32, #tpu.memory_space<vmem>>, vector<16x128xf32>,
    return
  }
  func.func @transform_0(%arg0: i32, %arg1: i32) -> (i32, i32) {
    %c0_i32 = arith.constant 0 : i32
    %c0_i32_0 = arith.constant 0 : i32
    return %arg0, %c0_i32 : i32, i32
  }
  func.func @transform_1(%arg0: i32, %arg1: i32) -> (i32, i32) {
    %c0_i32 = arith.constant 0 : i32
    %c0_i32_0 = arith.constant 0 : i32
    return %arg1, %c0_i32 : i32, i32
  }
  func.func @transform_2(%arg0: i32, %arg1: i32) -> (i32, i32) {
    %c0_i32 = arith.constant 0 : i32
    %c0_i32_0 = arith.constant 0 : i32
    return %c0_i32, %arg1 : i32, i32
  }
  func.func @transform_3(%arg0: i32, %arg1: i32) -> (i32, i32) {
    %c0_i32 = arith.constant 0 : i32
    return %arg0, %arg1 : i32, i32
  }
}

</mosaic_0001>

<bundles_post_ra>
// kernel: tpu_custom_call.1
= control target key start
LH: loop header
LB: loop body
LE: loop exit
PB: predicated region body
PF: predicated region fallthrough
CT: control target
= control target key end

     0   :  { %8 = vsyncpa [#allocation3], 0  ;;  %s260_s0 = inlined_call_operand.hbm [shape: f32[16,128], index: 0, kind: input, shape index: {}]   ;;  %s261_s1 = inlined_call_operand.hbm [shape: f32[128,128], index: 1, kind: input, shape index: {}]   ;;  %s262_s2 = inlined_call_operand.vmem [shape: f32[1,128], index: 2, kind: input, shape index: {}]   ;;  %s263_s3 = inlined_call_operand.hbm [shape: f32[16,128], index: 3, kind: output, shape index: {}]  }
   0x1   :  { %9 = vsyncpa [#allocation6], 0 }
   0x2   :  { %10 = vsyncpa [#allocation4], 0  ;;  %s15_s14 = sshll.u32 %s260_s0, 4  ;;  %s214_s15 = smov [#allocation2]   ;;  %s16_s14 = int_to_ptr.hbm [resolvable:$true] %s15_s14 }
   0x3   :  { %s17_s16 = sshll.u32 %s214_s15, 4  ;;  %s28_s19 = sshll.u32 %s261_s1, 4  ;;  %s18_s16 = int_to_ptr.vmem [resolvable:$true] %s17_s16  ;;  %s29_s19 = int_to_ptr.hbm [resolvable:$true] %s28_s19 }
   0x4   :  { %s215_s20 = smov 128   ;;  %s216_s21 = smov 8  }
   0x5   :  { %23 = dma.hbm_to_vmem [thread:$0]  %s16_s14, 256, %s18_s16, [#allocation3], %s215_s20, %s215_s20, %s216_s21  }
   0x6   :  { %s217_s22 = smov [#allocation5]  }
   0x7   :  { %s30_s23 = sshll.u32 %s217_s22, 4  ;;  %s31_s23 = int_to_ptr.vmem [resolvable:$true] %s30_s23 }
   0x8   :  { %36 = dma.hbm_to_vmem [thread:$0]  %s29_s19, 2048, %s31_s23, [#allocation6], %s215_s20, %s215_s20, %s216_s21  }
   0x9   :  { %208 = dma.done.wait [#allocation3], 256  }
   0xa   :  { %209 = vsyncadd [#allocation3], 4294967040 }
   0xb   :  { %210 = dma.done.wait [#allocation6], 2048  }
   0xc   :  { %211 = vsyncadd [#allocation6], 4294965248  ;;  %v64_v0 = vld [vmem:[#allocation5 + $0x78] sm:$0xff]  ;;  %v63_v1 = vld [vmem:[#allocation5 + $0x70] sm:$0xff]  ;;  %s218_s24 = smov [#allocation7]   ;;  %s100_s28 = sshll.u32 %s263_s3, 4  ;;  %s101_s28 = int_to_ptr.hbm [resolvable:$true] %s100_s28 }
   0xd   :  { %69 = vmatpush.xpose.msra.mxu0 %v64_v0  ;;  %114 = vmatpush.xpose.msra.mxu1 %v64_v0  ;;  %v62_v2 = vld [vmem:[#allocation5 + $0x68] sm:$0xff]  ;;  %v61_v3 = vld [vmem:[#allocation5 + $0x60] sm:$0xff]  ;;  %v60_v4 = vld [vmem:[#allocation5 + $0x58] sm:$0xff]  ;;  %s98_s25 = sshll.u32 %s218_s24, 4  ;;  %s99_s25 = int_to_ptr.vmem [resolvable:$true] %s98_s25 }
   0xe   :  { %v59_v5 = vld [vmem:[#allocation5 + $0x50] sm:$0xff]  ;;  %v58_v6 = vld [vmem:[#allocation5 + $0x48] sm:$0xff]  ;;  %v57_v7 = vld [vmem:[#allocation5 + $0x40] sm:$0xff] }
   0xf   :  { %v56_v8 = vld [vmem:[#allocation5 + $0x38] sm:$0xff]  ;;  %v55_v9 = vld [vmem:[#allocation5 + $0x30] sm:$0xff]  ;;  %v54_v10 = vld [vmem:[#allocation5 + $0x28] sm:$0xff] }
  0x10   :  { %v53_v11 = vld [vmem:[#allocation5 + $0x20] sm:$0xff]  ;;  %v52_v12 = vld [vmem:[#allocation5 + $0x18] sm:$0xff]  ;;  %v51_v13 = vld [vmem:[#allocation5 + $0x10] sm:$0xff] }
  0x11   :  { %70 = vmatpush.xpose.msra.mxu0 %v63_v1  ;;  %115 = vmatpush.xpose.msra.mxu1 %v63_v1  ;;  %v50_v14 = vld [vmem:[#allocation5 + $0x8] sm:$0xff]  ;;  %v49_v15 = vld [vmem:[#allocation5] sm:$0xff]  ;;  %v47_v16 = vld [vmem:[#allocation2] sm:$0xff] }
  0x12   :  { %v48_v17 = vld [vmem:[#allocation2 + $0x8] sm:$0xff]  ;;  %v135_v18 = vld [vmem:[%s262_s2] ss:$0 sm:$0xff] }
  0x15   :  { %71 = vmatpush.xpose.msra.mxu0 %v62_v2  ;;  %116 = vmatpush.xpose.msra.mxu1 %v62_v2 }
  0x19   :  { %72 = vmatpush.xpose.msra.mxu0 %v61_v3  ;;  %117 = vmatpush.xpose.msra.mxu1 %v61_v3 }
  0x1d   :  { %73 = vmatpush.xpose.msra.mxu0 %v60_v4  ;;  %118 = vmatpush.xpose.msra.mxu1 %v60_v4 }
  0x21   :  { %74 = vmatpush.xpose.msra.mxu0 %v59_v5  ;;  %119 = vmatpush.xpose.msra.mxu1 %v59_v5 }
  0x25   :  { %75 = vmatpush.xpose.msra.mxu0 %v58_v6  ;;  %120 = vmatpush.xpose.msra.mxu1 %v58_v6 }
  0x29   :  { %76 = vmatpush.xpose.msra.mxu0 %v57_v7  ;;  %121 = vmatpush.xpose.msra.mxu1 %v57_v7 }
  0x2d   :  { %77 = vmatpush.xpose.msra.mxu0 %v56_v8  ;;  %122 = vmatpush.xpose.msra.mxu1 %v56_v8 }
  0x31   :  { %78 = vmatpush.xpose.msra.mxu0 %v55_v9  ;;  %123 = vmatpush.xpose.msra.mxu1 %v55_v9 }
  0x35   :  { %79 = vmatpush.xpose.msra.mxu0 %v54_v10  ;;  %124 = vmatpush.xpose.msra.mxu1 %v54_v10 }
  0x39   :  { %80 = vmatpush.xpose.msra.mxu0 %v53_v11  ;;  %125 = vmatpush.xpose.msra.mxu1 %v53_v11 }
  0x3d   :  { %81 = vmatpush.xpose.msra.mxu0 %v52_v12  ;;  %126 = vmatpush.xpose.msra.mxu1 %v52_v12 }
  0x41   :  { %82 = vmatpush.xpose.msra.mxu0 %v51_v13  ;;  %127 = vmatpush.xpose.msra.mxu1 %v51_v13 }
  0x45   :  { %83 = vmatpush.xpose.msra.mxu0 %v50_v14  ;;  %128 = vmatpush.xpose.msra.mxu1 %v50_v14 }
  0x49   :  { %84 = vmatpush.xpose.msra.mxu0 %v49_v15  ;;  %129 = vmatpush.xpose.msra.mxu1 %v49_v15 }
  0x4c   :  { %85 = vmatmul.f32.vlgmr.msra.gmra.mxu0 %v47_v16  ;;  %88 = vmatmul.f32.vlgmr.msra.gmra.mxu1 %v48_v17 }
  0xc9   :  { %v86_v19 = vpop.f32.mrf.mxu0  ;;  %v89_v20 = vpop.f32.mrf.mxu1 }
  0xca   :  { %v87_v21 = vadd.f32 %v135_v18, %v86_v19  ;;  %v90_v22 = vadd.f32 %v135_v18, %v89_v20 }
  0xcc   :  { %92 = vst [vmem:[#allocation7] sm:$0xff] %v87_v21 }
  0xcd   :  { %93 = vst [vmem:[#allocation7 + $0x8] sm:$0xff] %v90_v22 }
  0xce   :  { %106 = dma.vmem_to_hbm [thread:$0]  %s99_s25, 256, %s101_s28, [#allocation4], %s215_s20, %s215_s20, %s216_s21  }
  0xcf   :  { %212 = dma.done.wait [#allocation4], 256  }
  0xd0   :  { %213 = vsyncadd [#allocation4], 4294967040 }
  0xd1   :  { %111 = vsyncpa [#allocation3], 1 }
  0xd2   :  { %112 = vsyncpa [#allocation6], 1 }
  0xd3   :  { %113 = vsyncpa [#allocation4], 1 }

</bundles_post_ra>
